<compile_context>
chip_gen: v7x
topology: tpu7x:2x2x1
jax: 0.10.0
libtpu: 0.0.40
codegen_flags: <defaults>
</compile_context>

<pallas_src>
import functools
import math

import jax
import jax.numpy as jnp
from jax.experimental import pallas as pl
from jax.experimental.pallas import tpu as pltpu


def _lcm(a: int, b: int) -> int:
    return a * b // math.gcd(a, b)


def _weighted_sum_kernel(pred_ref, target_ref, w_ref, out_ref):
    """Accumulate 8 sublane-partial rows of sum_rows(w * (pred - target)) per lane."""

    @pl.when(pl.program_id(1) == 0)
    def _():
        out_ref[...] = jnp.zeros_like(out_ref)

    # Cast each operand to f32 BEFORE subtracting (avoids bf16 cancellation error).
    diff = pred_ref[...].astype(jnp.float32) - target_ref[...].astype(jnp.float32)
    wd = diff * w_ref[...]                                   # (T, Lf) f32
    t, lanes = wd.shape
    # Collapse row groups to 8 sublane partials: pure vreg adds (no XLU work).
    out_ref[...] += jnp.sum(wd.reshape(t // 8, 8, lanes), axis=0)   # (8, Lf)


def _per_feature_weighted_sum(pred2, target2, w_fold, *, tile_rows, n_parts,
                              inner_steps, w_blocks):
    """pred2/target2: (R, Lf); w_fold: (w_rows, Lf). Returns lane sums (Lf,) f32."""
    _, Lf = pred2.shape
    T = tile_rows

    def data_map(c, i):
        return (c * inner_steps + i, 0)

    if w_blocks == 1:
        w_map = lambda c, i: (0, 0)        # single weight block, DMA'd once
    else:
        w_map = data_map                   # streamed folded weights (fallback)

    out = pl.pallas_call(
        _weighted_sum_kernel,
        out_shape=jax.ShapeDtypeStruct((n_parts * 8, Lf), jnp.float32),
        grid_spec=pltpu.PrefetchScalarGridSpec(
            num_scalar_prefetch=0,
            grid=(n_parts, inner_steps),
            in_specs=[
                pl.BlockSpec((T, Lf), data_map),
                pl.BlockSpec((T, Lf), data_map),
                pl.BlockSpec((T, Lf), w_map),
            ],
            out_specs=pl.BlockSpec((8, Lf), lambda c, i: (c, 0)),
        ),
        compiler_params=pltpu.CompilerParams(
            # axis 0: independent partitions (megacore on v7x); axis 1: reduction.
            dimension_semantics=("parallel", "arbitrary"),
            vmem_limit_bytes=48 * 1024 * 1024,
        ),
    )(pred2, target2, w_fold)
    return jnp.sum(out, axis=0)            # (Lf,)


def _pick_tiling(E, Lf, itemsize, period_rows, max_block_bytes):
    """Choose (tile_rows, total_rows): tile_rows % 8 == 0, tile_rows*Lf*itemsize
    roughly <= max_block_bytes, total_rows % tile_rows == 0 and >= ceil(E/Lf)."""
    r_exact = -(-E // Lf)
    r8 = -(-r_exact // 8) * 8
    t_max = max(8, (max_block_bytes // (Lf * itemsize)) // 8 * 8)
    if r8 <= t_max:
        return r8, r8                                   # single block
    align = _lcm(8, period_rows)
    if align <= t_max:
        c = (t_max // align) * align
        while c >= align:                               # prefer period-aligned tiles
            if r8 % c == 0:
                return c, r8
            c -= align
    c = t_max
    while c >= 8:                                       # any multiple of 8 dividing r8
        if r8 % c == 0:
            return c, r8
        c -= 8
    t = (t_max // align) * align if align <= t_max else t_max
    return t, -(-r8 // t) * t                           # pad rows up to tile multiple


def _folded_weights(node_weights, F, Lf, n_rows):
    """(n_rows, Lf) f32 W with W.reshape(-1)[e] == node_weights[(e // F) % N]."""
    period = node_weights.shape[0] * F
    reps = -(-(n_rows * Lf) // period)
    flat = jnp.tile(jnp.repeat(node_weights.astype(jnp.float32), F), reps)
    return flat[: n_rows * Lf].reshape(n_rows, Lf)


class BaseWeightedLossPallas:
    """JAX/Pallas re-implementation of anemoi BaseWeightedLoss.forward (ignore_nans=False)."""

    def __init__(self, node_weights, feature_scalar=None,
                 max_block_bytes=2 * 1024 * 1024):
        self.node_weights = jnp.asarray(node_weights, jnp.float32)   # (N,)
        # ScaleTensor stand-in: a single per-feature scalar on the last dim (or None).
        self.feature_scalar = (
            None if feature_scalar is None else jnp.asarray(feature_scalar, jnp.float32)
        )
        self.max_block_bytes = int(max_block_bytes)

    @functools.partial(jax.jit, static_argnums=(0, 3))
    def forward(self, pred, target, squash=True):
        bs, ens, N, F = pred.shape
        B = bs * ens
        E = B * N * F

        Lf = _lcm(F, 128)                                    # lane-dense fold width
        period_rows = _lcm(N * F, Lf) // Lf                  # weight period in folded rows
        itemsize = jnp.dtype(pred.dtype).itemsize

        T, R = _pick_tiling(E, Lf, itemsize, period_rows, self.max_block_bytes)
        n_blocks = R // T
        n_parts = 2 if (n_blocks >= 2 and n_blocks % 2 == 0) else 1
        inner_steps = n_blocks // n_parts

        E_pad = R * Lf
        pred_flat = pred.reshape(-1)
        target_flat = target.reshape(-1)
        if E_pad != E:
            # TODO(synk): this pads with a full-array copy; only hit when the
            # flattened size has no VMEM-sized aligned divisor.
            pred_flat = jnp.pad(pred_flat, (0, E_pad - E))
            target_flat = jnp.pad(target_flat, (0, E_pad - E))
        pred2 = pred_flat.reshape(R, Lf)
        target2 = target_flat.reshape(R, Lf)

        if T % period_rows == 0:
            w_rows, w_blocks = T, 1          # one weight block reused every grid step
        else:
            w_rows, w_blocks = R, n_blocks   # fallback: stream folded weights
        w_fold = _folded_weights(self.node_weights, F, Lf, w_rows)

        lane_sums = _per_feature_weighted_sum(
            pred2, target2, w_fold, tile_rows=T, n_parts=n_parts,
            inner_steps=inner_steps, w_blocks=w_blocks)      # (Lf,)

        # lane l holds feature l % F  ->  fold lanes back to per-feature sums.
        S = lane_sums.reshape(Lf // F, F).sum(axis=0)        # (F,)
        if self.feature_scalar is not None:
            S = S * self.feature_scalar                      # hoisted feature scaling

        denom = jnp.float32(B) * jnp.sum(self.node_weights)  # sum(w.expand_as(x))
        if squash:
            return jnp.sum(S) / jnp.float32(F) / denom       # scalar
        return S / denom                                     # (F,)


def _reference(pred, target, node_weights, feature_scalar, squash):
    """Plain-JAX reference mirroring the PyTorch code path (ignore_nans=False)."""
    out = pred.astype(jnp.float32) - target.astype(jnp.float32)
    if feature_scalar is not None:
        out = out * feature_scalar
    w = node_weights
    if squash:
        x = jnp.mean(out, axis=-1)                           # (bs, ens, N)
        x = x * w
        x = x / jnp.sum(jnp.broadcast_to(w, x.shape))
        return jnp.sum(x)
    x = out * w[..., None]
    x = x / jnp.sum(jnp.broadcast_to(w[..., None], x.shape), axis=(0, 1, 2))
    return jnp.sum(x, axis=(0, 1, 2))


if __name__ == "__main__":
    key = jax.random.PRNGKey(0)
    bs, ens, N, F = 2, 2, 64, 8           # (bs, ensemble, lat*lon, n_outputs)
    k1, k2, k3, k4 = jax.random.split(key, 4)
    pred = jax.random.normal(k1, (bs, ens, N, F), jnp.float32)
    target = jax.random.normal(k2, (bs, ens, N, F), jnp.float32)
    node_weights = jax.random.uniform(k3, (N,), jnp.float32, minval=0.1, maxval=1.0)
    feature_scalar = jax.random.uniform(k4, (F,), jnp.float32, minval=0.5, maxval=1.5)

    loss_mod = BaseWeightedLossPallas(node_weights, feature_scalar)

    # 1) default path (single big lane-dense block): squash True and False.
    for squash in (True, False):
        got = loss_mod.forward(pred, target, squash=squash)
        jax.block_until_ready(got)
        ref = _reference(pred, target, node_weights, feature_scalar, squash)
        assert got.shape == ref.shape
        assert jnp.allclose(got, ref, rtol=1e-5, atol=1e-5), (squash, got, ref)

    # 2) force tiny tiles to exercise the multi-block grid, the 2-way "parallel"
    #    partition split, and the streamed-folded-weights fallback.
    N2 = 256
    k5, k6, k7 = jax.random.split(k4, 3)
    pred2 = jax.random.normal(k5, (bs, ens, N2, F), jnp.float32)
    target2 = jax.random.normal(k6, (bs, ens, N2, F), jnp.float32)
    nw2 = jax.random.uniform(k7, (N2,), jnp.float32, minval=0.1, maxval=1.0)
    tiny = BaseWeightedLossPallas(nw2, None, max_block_bytes=4096)
    got2 = tiny.forward(pred2, target2, squash=False)
    jax.block_until_ready(got2)
    ref2 = _reference(pred2, target2, nw2, None, squash=False)
    assert jnp.allclose(got2, ref2, rtol=1e-5, atol=1e-5)

    # 3) bf16 inputs stream at half the HBM bytes; math is f32 inside the kernel.
    predb = pred.astype(jnp.bfloat16)
    targetb = target.astype(jnp.bfloat16)
    got3 = loss_mod.forward(predb, targetb, squash=True)
    jax.block_until_ready(got3)
    ref3 = _reference(predb, targetb, node_weights, feature_scalar, True)
    assert jnp.allclose(got3, ref3, rtol=1e-5, atol=1e-5)

    print("KERNEL_OK")
</pallas_src>

<mosaic_0001>
module attributes {stable_mosaic.version = 11 : i64} {
  func.func @_weighted_sum_kernel(%arg0: i32, %arg1: i32, %arg2: memref<16x128xf32, #tpu.memory_space<vmem>>, %arg3: memref<16x128xf32, #tpu.memory_space<vmem>>, %arg4: memref<16x128xf32, #tpu.memory_space<vmem>>, %arg5: memref<8x128xf32, #tpu.memory_space<vmem>>) attributes {dimension_semantics = [#tpu.dimension_semantics<parallel>, #tpu.dimension_semantics<arbitrary>], iteration_bounds = array<i64: 1, 1>, scalar_prefetch = 0 : i64, scratch_operands = 0 : i64, tpu.core_type = #tpu.core_type<tc>, window_params = [{transform_indices = @transform_0, window_bounds = array<i64: 16, 128>}, {transform_indices = @transform_1, window_bounds = array<i64: 16, 128>}, {pipeline_mode = #tpu.pipeline_mode<synchronous>, transform_indices = @transform_2, window_bounds = array<i64: 16, 128>}, {transform_indices = @transform_3, window_bounds = array<i64: 8, 128>}]} {
    %c0_i32 = arith.constant 0 : i32
    %0 = arith.cmpi eq, %arg1, %c0_i32 : i32
    %1 = arith.extui %0 : i1 to i32
    %c0_i32_0 = arith.constant 0 : i32
    %2 = arith.cmpi ne, %1, %c0_i32_0 : i32
    scf.if %2 {
      %cst_10 = arith.constant 0.000000e+00 : f32
      %13 = vector.broadcast %cst_10 : f32 to vector<8x128xf32>
      %c0_11 = arith.constant 0 : index
      %c0_12 = arith.constant 0 : index
      %14 = vector.load %arg5[%c0_11, %c0_12] : memref<8x128xf32, #tpu.memory_space<vmem>>, vector<8x128xf32>
      tpu.vector_store %arg5[%c0_11, %c0_12], %13 {strides = array<i32>} : memref<8x128xf32, #tpu.memory_space<vmem>>, vector<8x128xf32>,
    } else {
    }
    %c0 = arith.constant 0 : index
    %c0_1 = arith.constant 0 : index
    %3 = vector.load %arg2[%c0, %c0_1] : memref<16x128xf32, #tpu.memory_space<vmem>>, vector<16x128xf32>
    %c0_2 = arith.constant 0 : index
    %c0_3 = arith.constant 0 : index
    %4 = vector.load %arg3[%c0_2, %c0_3] : memref<16x128xf32, #tpu.memory_space<vmem>>, vector<16x128xf32>
    %5 = arith.subf %3, %4 : vector<16x128xf32>
    %c0_4 = arith.constant 0 : index
    %c0_5 = arith.constant 0 : index
    %6 = vector.load %arg4[%c0_4, %c0_5] : memref<16x128xf32, #tpu.memory_space<vmem>>, vector<16x128xf32>
    %7 = arith.mulf %5, %6 : vector<16x128xf32>
    %c0_6 = arith.constant 0 : index
    %c0_7 = arith.constant 0 : index
    %8 = vector.load %arg5[%c0_6, %c0_7] : memref<8x128xf32, #tpu.memory_space<vmem>>, vector<8x128xf32>
    %9 = vector.shape_cast %7 : vector<16x128xf32> to vector<2x8x128xf32>
    %cst = arith.constant dense<0.000000e+00> : vector<8x128xf32>
    %10 = vector.multi_reduction <add>, %9, %cst [0] : vector<2x8x128xf32> to vector<8x128xf32>
    %11 = arith.addf %8, %10 : vector<8x128xf32>
    %c0_8 = arith.constant 0 : index
    %c0_9 = arith.constant 0 : index
    %12 = vector.load %arg5[%c0_8, %c0_9] : memref<8x128xf32, #tpu.memory_space<vmem>>, vector<8x128xf32>
    tpu.vector_store %arg5[%c0_8, %c0_9], %11 {strides = array<i32>} : memref<8x128xf32, #tpu.memory_space<vmem>>, vector<8x128xf32>,
    return
  }
  func.func @transform_0(%arg0: i32, %arg1: i32) -> (i32, i32) {
    %c1_i32 = arith.constant 1 : i32
    %0 = arith.muli %arg0, %c1_i32 : i32
    %1 = arith.addi %0, %arg1 : i32
    %c0_i32 = arith.constant 0 : i32
    %c0_i32_0 = arith.constant 0 : i32
    return %1, %c0_i32 : i32, i32
  }
  func.func @transform_1(%arg0: i32, %arg1: i32) -> (i32, i32) {
    %c1_i32 = arith.constant 1 : i32
    %0 = arith.muli %arg0, %c1_i32 : i32
    %1 = arith.addi %0, %arg1 : i32
    %c0_i32 = arith.constant 0 : i32
    %c0_i32_0 = arith.constant 0 : i32
    return %1, %c0_i32 : i32, i32
  }
  func.func @transform_2(%arg0: i32, %arg1: i32) -> (i32, i32) {
    %c0_i32 = arith.constant 0 : i32
    %c0_i32_0 = arith.constant 0 : i32
    %c0_i32_1 = arith.constant 0 : i32
    return %c0_i32, %c0_i32_0 : i32, i32
  }
  func.func @transform_3(%arg0: i32, %arg1: i32) -> (i32, i32) {
    %c0_i32 = arith.constant 0 : i32
    %c0_i32_0 = arith.constant 0 : i32
    return %arg0, %c0_i32 : i32, i32
  }
}

</mosaic_0001>

<bundles_post_ra>
// kernel: forward.1
= control target key start
LH: loop header
LB: loop body
LE: loop exit
PB: predicated region body
PF: predicated region fallthrough
CT: control target
= control target key end

     0   :  { %s135_s0 = inlined_call_operand.vmem [shape: f32[16,128], index: 0, kind: input, shape index: {}]   ;;  %s136_s1 = inlined_call_operand.vmem [shape: f32[16,128], index: 1, kind: input, shape index: {}]   ;;  %s137_s2 = inlined_call_operand.vmem [shape: f32[16,128], index: 2, kind: input, shape index: {}]   ;;  %s138_s3 = inlined_call_operand.vmem [shape: f32[8,128], index: 3, kind: output, shape index: {}]  }
   0x1   :  { %v63_v0 = vld [vmem:[%s135_s0] sm:$0xff]  ;;  %v64_v1 = vld [vmem:[%s135_s0 + $0x8] sm:$0xff] }
   0x2   :  { %v65_v2 = vld [vmem:[%s136_s1] sm:$0xff]  ;;  %v66_v3 = vld [vmem:[%s136_s1 + $0x8] sm:$0xff] }
   0x3   :  { %v67_v4 = vsub.f32 %v63_v0, %v65_v2  ;;  %v69_v5 = vld [vmem:[%s137_s2] sm:$0xff]  ;;  %v70_v6 = vld [vmem:[%s137_s2 + $0x8] sm:$0xff]  ;;  %v68_v7 = vsub.f32 %v64_v1, %v66_v3 }
   0x5   :  { %v71_v8 = vmul.f32 %v69_v5, %v67_v4  ;;  %v72_v9 = vmul.f32 %v70_v6, %v68_v7 }
   0x7   :  { %v74_v10 = vadd.f32 %v72_v9, %v71_v8 }
   0x9   :  { %76 = vst [vmem:[%s138_s3] sm:$0xff] %v74_v10 }

</bundles_post_ra>
